<compile_context>
chip_gen: v6e
topology: v6e:2x2x1
jax: 0.10.0
libtpu: 0.0.40
codegen_flags: <defaults>
</compile_context>

<pallas_src>
import functools

import jax
import jax.numpy as jnp
from jax.experimental import pallas as pl
from jax.experimental.pallas import tpu as pltpu

NEG_BIG = -1e9   # bias for padded class rows (exp underflows to exactly 0)


def _round_up(n, m):
    return ((n + m - 1) // m) * m


def _mood_mlp_kernel(x_ref, w_ref, b_ref, o_ref, *,
                     in_pad, h1, h2, c_pad, r1, r2, r3):
    # x_ref: (in_pad, TB)   w_ref: (rows, cols)   b_ref: (rows, 1)
    # o_ref: (c_pad, TB)    -- batch on the lane axis everywhere.
    x = x_ref[...]                                                # (in_pad, TB)

    # fc1 + ReLU:  (h1, in_pad) @ (in_pad, TB)
    h = jnp.dot(w_ref[r1:r1 + h1, :in_pad], x,
                preferred_element_type=jnp.float32) + b_ref[r1:r1 + h1]
    h = jnp.maximum(h, 0.0)                                       # (h1, TB)

    # fc2 + ReLU:  (h2, h1) @ (h1, TB)
    h = jnp.dot(w_ref[r2:r2 + h2, :h1], h,
                preferred_element_type=jnp.float32) + b_ref[r2:r2 + h2]
    h = jnp.maximum(h, 0.0)                                       # (h2, TB)

    # fc3:  (c_pad, h2) @ (h2, TB); padded class rows have zero weights and
    # bias NEG_BIG, so they vanish after exp.
    logits = jnp.dot(w_ref[r3:r3 + c_pad, :h2], h,
                     preferred_element_type=jnp.float32) + b_ref[r3:r3 + c_pad]

    # Softmax over the class (sublane) axis — only c_pad (=8) rows.
    m = jnp.max(logits, axis=0, keepdims=True)                    # (1, TB)
    e = jnp.exp(logits - m)                                       # padded rows -> 0
    s = jnp.sum(e, axis=0, keepdims=True)
    o_ref[...] = e / s                                            # exact divide -> rows sum to 1


def prepare_params(params):
    """One-time packing of (w1,b1,w2,b2,w3,b3) into padded, transposed slabs.

    Call once and reuse the result across forward calls; the per-call wrapper
    does no parameter packing.
    """
    w1, b1, w2, b2, w3, b3 = params
    in_features, hidden1 = w1.shape
    hidden2 = w2.shape[1]
    num_classes = w3.shape[1]

    in_pad = _round_up(in_features, 8)      # 13 -> 16
    h1 = _round_up(hidden1, 8)              # 64
    h2 = _round_up(hidden2, 8)              # 32
    c_pad = _round_up(num_classes, 8)       # 5 -> 8

    r1, r2, r3 = 0, h1, h1 + h2
    rows = r3 + c_pad                       # 104
    cols = max(in_pad, h1, h2)              # 64

    # All three W^T matrices in ONE zero-padded slab (single resident DMA).
    # NOTE: on v5e this slab could be stored in bf16 (f32 accumulation kept)
    # for ~2-4x MXU throughput; kept f32 here for exact parity with PyTorch.
    w_slab = jnp.zeros((rows, cols), jnp.float32)
    w_slab = w_slab.at[r1:r1 + hidden1, :in_features].set(w1.T.astype(jnp.float32))
    w_slab = w_slab.at[r2:r2 + hidden2, :hidden1].set(w2.T.astype(jnp.float32))
    w_slab = w_slab.at[r3:r3 + num_classes, :hidden2].set(w3.T.astype(jnp.float32))

    # Biases packed as one column; padded class rows get NEG_BIG so their
    # logits underflow to zero after exp (their weight rows are exactly zero).
    b_slab = jnp.zeros((rows, 1), jnp.float32)
    b_slab = b_slab.at[r1:r1 + hidden1, 0].set(b1.reshape(-1).astype(jnp.float32))
    b_slab = b_slab.at[r2:r2 + hidden2, 0].set(b2.reshape(-1).astype(jnp.float32))
    b_slab = b_slab.at[r3 + num_classes:r3 + c_pad, 0].set(NEG_BIG)
    b_slab = b_slab.at[r3:r3 + num_classes, 0].set(b3.reshape(-1).astype(jnp.float32))

    meta = dict(in_features=in_features, num_classes=num_classes,
                in_pad=in_pad, h1=h1, h2=h2, c_pad=c_pad,
                r1=r1, r2=r2, r3=r3, rows=rows, cols=cols)
    return w_slab, b_slab, meta


def mood_classifier_forward(x, packed, *, tb=None):
    """x: (B, input_size) f32 -> (B, num_classes) softmax probabilities."""
    w_slab, b_slab, meta = packed
    B = x.shape[0]
    in_features = meta["in_features"]
    num_classes = meta["num_classes"]
    in_pad, c_pad = meta["in_pad"], meta["c_pad"]

    # Batch tile: multiple of 128 (batch is the lane axis).  Aim for >= 2
    # grid steps once B is large enough (v7x dual-TC), cap at 2048 to
    # amortize per-step pipeline overhead while staying far under VMEM.
    if tb is None:
        tb = min(2048, max(128, _round_up(pl.cdiv(B, 2), 128)))
    assert tb % 128 == 0
    n_tiles = pl.cdiv(B, tb)
    b_pad = n_tiles * tb

    # Per-call input prep only: transpose so batch rides the lane axis.
    # Zero-padded rows/cols are inert; padded batch columns are sliced off.
    x_t = jnp.zeros((in_pad, b_pad), jnp.float32)
    x_t = x_t.at[:in_features, :B].set(x.T.astype(jnp.float32))

    kernel = functools.partial(
        _mood_mlp_kernel,
        in_pad=in_pad, h1=meta["h1"], h2=meta["h2"], c_pad=c_pad,
        r1=meta["r1"], r2=meta["r2"], r3=meta["r3"])

    out_t = pl.pallas_call(
        kernel,
        out_shape=jax.ShapeDtypeStruct((c_pad, b_pad), jnp.float32),
        grid=(n_tiles,),
        in_specs=[
            pl.BlockSpec((in_pad, tb), lambda i: (0, i)),                   # x tiles
            pl.BlockSpec((meta["rows"], meta["cols"]), lambda i: (0, 0)),   # weights (resident)
            pl.BlockSpec((meta["rows"], 1), lambda i: (0, 0)),              # biases  (resident)
        ],
        out_specs=pl.BlockSpec((c_pad, tb), lambda i: (0, i)),
        compiler_params=pltpu.CompilerParams(
            dimension_semantics=("parallel",)),
    )(x_t, w_slab, b_slab)

    # (c_pad, b_pad) -> (B, num_classes)
    return out_t[:num_classes, :B].T


def init_params(key, input_size=13, hidden_size=64, num_classes=5):
    """Deterministic init mimicking PyTorch Linear default U[-1/sqrt(fan_in), 1/sqrt(fan_in)]."""
    def linear(key, fan_in, fan_out):
        kw, kb = jax.random.split(key)
        bound = 1.0 / jnp.sqrt(fan_in)
        w = jax.random.uniform(kw, (fan_in, fan_out), jnp.float32, -bound, bound)
        b = jax.random.uniform(kb, (1, fan_out), jnp.float32, -bound, bound)
        return w, b

    k1, k2, k3 = jax.random.split(key, 3)
    w1, b1 = linear(k1, input_size, hidden_size)
    w2, b2 = linear(k2, hidden_size, hidden_size // 2)
    w3, b3 = linear(k3, hidden_size // 2, num_classes)
    return (w1, b1, w2, b2, w3, b3)


if __name__ == "__main__":
    key = jax.random.PRNGKey(0)
    k_params, k_x = jax.random.split(key)

    input_size, hidden_size, num_classes = 13, 64, 5
    batch = 8

    params = init_params(k_params, input_size, hidden_size, num_classes)
    x = jax.random.normal(k_x, (batch, input_size), jnp.float32)

    # One-time packing (hoisted out of the forward path), then a jitted forward.
    packed = prepare_params(params)
    forward = jax.jit(functools.partial(mood_classifier_forward, packed=packed))

    out = jax.block_until_ready(forward(x))

    # Pure-JAX reference.
    w1, b1, w2, b2, w3, b3 = params
    h = jnp.maximum(x @ w1 + b1, 0.0)
    h = jnp.maximum(h @ w2 + b2, 0.0)
    ref = jax.nn.softmax(h @ w3 + b3, axis=1)

    assert out.shape == (batch, num_classes)
    assert jnp.allclose(out, ref, atol=1e-4), "mismatch vs reference"
    assert jnp.allclose(jnp.sum(out, axis=1), 1.0, atol=1e-4), "rows must sum to 1"

    print("KERNEL_OK")
</pallas_src>

<mosaic_0001>
module attributes {stable_mosaic.version = 11 : i64} {
  func.func @_mood_mlp_kernel(%arg0: i32, %arg1: memref<16x128xf32, #tpu.memory_space<vmem>>, %arg2: memref<104x64xf32, #tpu.memory_space<vmem>>, %arg3: memref<104x1xf32, #tpu.memory_space<vmem>>, %arg4: memref<8x128xf32, #tpu.memory_space<vmem>>) attributes {dimension_semantics = [#tpu.dimension_semantics<parallel>], iteration_bounds = array<i64: 1>, scalar_prefetch = 0 : i64, scratch_operands = 0 : i64, tpu.core_type = #tpu.core_type<tc>, window_params = [{transform_indices = @transform_0, window_bounds = array<i64: 16, 128>}, {pipeline_mode = #tpu.pipeline_mode<synchronous>, transform_indices = @transform_1, window_bounds = array<i64: 104, 64>}, {pipeline_mode = #tpu.pipeline_mode<synchronous>, transform_indices = @transform_2, window_bounds = array<i64: 104, 1>}, {transform_indices = @transform_3, window_bounds = array<i64: 8, 128>}]} {
    %c0 = arith.constant 0 : index
    %c0_0 = arith.constant 0 : index
    %0 = vector.load %arg1[%c0, %c0_0] : memref<16x128xf32, #tpu.memory_space<vmem>>, vector<16x128xf32>
    %c0_1 = arith.constant 0 : index
    %c0_2 = arith.constant 0 : index
    %1 = vector.load %arg2[%c0_1, %c0_2] : memref<104x64xf32, #tpu.memory_space<vmem>>, vector<64x16xf32>
    %cst = arith.constant dense<0.000000e+00> : vector<64x128xf32>
    %2 = tpu.matmul %1, %0, %cst {dimension_numbers = #tpu.dot_dimension_numbers<[1], [0], [0], [1], [0, 0, 1, 1], [], []>} : vector<64x16xf32>, vector<16x128xf32>, vector<64x128xf32> -> vector<64x128xf32>
    %c0_3 = arith.constant 0 : index
    %c0_4 = arith.constant 0 : index
    %3 = vector.load %arg3[%c0_3, %c0_4] : memref<104x1xf32, #tpu.memory_space<vmem>>, vector<64x1xf32>
    %4 = vector.broadcast %3 : vector<64x1xf32> to vector<64x128xf32>
    %5 = arith.addf %2, %4 : vector<64x128xf32>
    %cst_5 = arith.constant 0.000000e+00 : f32
    %6 = vector.broadcast %cst_5 : f32 to vector<64x128xf32>
    %7 = arith.maximumf %5, %6 : vector<64x128xf32>
    %c64 = arith.constant 64 : index
    %c0_6 = arith.constant 0 : index
    %8 = vector.load %arg2[%c64, %c0_6] : memref<104x64xf32, #tpu.memory_space<vmem>>, vector<32x64xf32>
    %cst_7 = arith.constant dense<0.000000e+00> : vector<32x128xf32>
    %9 = tpu.matmul %8, %7, %cst_7 {dimension_numbers = #tpu.dot_dimension_numbers<[1], [0], [0], [1], [0, 0, 1, 1], [], []>} : vector<32x64xf32>, vector<64x128xf32>, vector<32x128xf32> -> vector<32x128xf32>
    %c64_8 = arith.constant 64 : index
    %c0_9 = arith.constant 0 : index
    %10 = vector.load %arg3[%c64_8, %c0_9] : memref<104x1xf32, #tpu.memory_space<vmem>>, vector<32x1xf32>
    %11 = vector.broadcast %10 : vector<32x1xf32> to vector<32x128xf32>
    %12 = arith.addf %9, %11 : vector<32x128xf32>
    %cst_10 = arith.constant 0.000000e+00 : f32
    %13 = vector.broadcast %cst_10 : f32 to vector<32x128xf32>
    %14 = arith.maximumf %12, %13 : vector<32x128xf32>
    %c96 = arith.constant 96 : index
    %c0_11 = arith.constant 0 : index
    %15 = vector.load %arg2[%c96, %c0_11] : memref<104x64xf32, #tpu.memory_space<vmem>>, vector<8x32xf32>
    %cst_12 = arith.constant dense<0.000000e+00> : vector<8x128xf32>
    %16 = tpu.matmul %15, %14, %cst_12 {dimension_numbers = #tpu.dot_dimension_numbers<[1], [0], [0], [1], [0, 0, 1, 1], [], []>} : vector<8x32xf32>, vector<32x128xf32>, vector<8x128xf32> -> vector<8x128xf32>
    %c96_13 = arith.constant 96 : index
    %c0_14 = arith.constant 0 : index
    %17 = vector.load %arg3[%c96_13, %c0_14] : memref<104x1xf32, #tpu.memory_space<vmem>>, vector<8x1xf32>
    %18 = vector.broadcast %17 : vector<8x1xf32> to vector<8x128xf32>
    %19 = arith.addf %16, %18 : vector<8x128xf32>
    %cst_15 = arith.constant dense<0xFF800000> : vector<128xf32>
    %20 = vector.multi_reduction <maximumf>, %19, %cst_15 [0] : vector<8x128xf32> to vector<128xf32>
    %21 = vector.shape_cast %20 : vector<128xf32> to vector<1x128xf32>
    %22 = vector.broadcast %21 : vector<1x128xf32> to vector<8x128xf32>
    %23 = arith.subf %19, %22 : vector<8x128xf32>
    %24 = math.exp %23 : vector<8x128xf32>
    %cst_16 = arith.constant dense<0.000000e+00> : vector<128xf32>
    %25 = vector.multi_reduction <add>, %24, %cst_16 [0] : vector<8x128xf32> to vector<128xf32>
    %26 = vector.shape_cast %25 : vector<128xf32> to vector<1x128xf32>
    %27 = vector.broadcast %26 : vector<1x128xf32> to vector<8x128xf32>
    %28 = arith.divf %24, %27 : vector<8x128xf32>
    %c0_17 = arith.constant 0 : index
    %c0_18 = arith.constant 0 : index
    %29 = vector.load %arg4[%c0_17, %c0_18] : memref<8x128xf32, #tpu.memory_space<vmem>>, vector<8x128xf32>
    tpu.vector_store %arg4[%c0_17, %c0_18], %28 {strides = array<i32>} : memref<8x128xf32, #tpu.memory_space<vmem>>, vector<8x128xf32>,
    return
  }
  func.func @transform_0(%arg0: i32) -> (i32, i32) {
    %c0_i32 = arith.constant 0 : i32
    %c0_i32_0 = arith.constant 0 : i32
    return %c0_i32, %arg0 : i32, i32
  }
  func.func @transform_1(%arg0: i32) -> (i32, i32) {
    %c0_i32 = arith.constant 0 : i32
    %c0_i32_0 = arith.constant 0 : i32
    %c0_i32_1 = arith.constant 0 : i32
    return %c0_i32, %c0_i32_0 : i32, i32
  }
  func.func @transform_2(%arg0: i32) -> (i32, i32) {
    %c0_i32 = arith.constant 0 : i32
    %c0_i32_0 = arith.constant 0 : i32
    %c0_i32_1 = arith.constant 0 : i32
    return %c0_i32, %c0_i32_0 : i32, i32
  }
  func.func @transform_3(%arg0: i32) -> (i32, i32) {
    %c0_i32 = arith.constant 0 : i32
    %c0_i32_0 = arith.constant 0 : i32
    return %c0_i32, %arg0 : i32, i32
  }
}

</mosaic_0001>

<bundles_post_ra>
// kernel: mood_classifier_forward.1
= control target key start
LH: loop header
LB: loop body
LE: loop exit
PB: predicated region body
PF: predicated region fallthrough
CT: control target
= control target key end

     0   :  { %8 = vsyncpa [#allocation3], 0  ;;  %s673_s0 = inlined_call_operand.vmem [shape: f32[16,128], index: 0, kind: input, shape index: {}]   ;;  %s674_s1 = inlined_call_operand.hbm [shape: f32[104,64], index: 1, kind: input, shape index: {}]   ;;  %s675_s2 = inlined_call_operand.hbm [shape: f32[104,1], index: 2, kind: input, shape index: {}]   ;;  %s676_s3 = inlined_call_operand.vmem [shape: f32[8,128], index: 3, kind: output, shape index: {}]  }
   0x1   :  { %9 = vsyncpa [#allocation5], 0  ;;  %s619_s12 = smov [#allocation2]  }
   0x2   :  { %s17_s13 = sshll.u32 %s619_s12, 4  ;;  %s18_s13 = int_to_ptr.vmem [resolvable:$true] %s17_s13 }
   0x3   :  { %s583_s14 = scalar_lea.vmem %s18_s13, 1664  ;;  %p588_p1 = scmp.lt.s32.totalorder %s18_s13, %s18_s13 }
   0x4   :  { %p584_p0 = scmp.ne.s32.totalorder %s18_s13, %s583_s14  ;;  %p589_p2 = scmp.lt.s32.totalorder %s583_s14, %s583_s14 }
   0x6   :  { %p590_p3 = por %p589_p2, %p588_p1 }
   0x8   :  { %p591_p4 = pnand %p590_p3, %p584_p0 }
   0xa   :  { %594 = shalt.err (!%p591_p4)
}
   0xb   :  { %s620_s15 = smov 128   ;;  %s621_s16 = smov 8  }
   0xc   :  { %23 = dma.hbm_to_vmem [thread:$0]  %s674_s1, 1664, %s18_s13, [#allocation3], %s620_s15, %s620_s15, %s621_s16  }
   0xd   :  { %s622_s19 = smov [#allocation4]  }
   0xe   :  { %s29_s20 = sshll.u32 %s622_s19, 4  ;;  %s30_s20 = int_to_ptr.vmem [resolvable:$true] %s29_s20 }
   0xf   :  { %s603_s21 = scalar_lea.vmem %s30_s20, 1664  ;;  %p608_p6 = scmp.lt.s32.totalorder %s30_s20, %s30_s20 }
  0x10   :  { %p604_p5 = scmp.ne.s32.totalorder %s30_s20, %s603_s21  ;;  %p609_p7 = scmp.lt.s32.totalorder %s603_s21, %s603_s21 }
  0x12   :  { %p610_p8 = por %p609_p7, %p608_p6 }
  0x14   :  { %p611_p9 = pnand %p610_p8, %p604_p5 }
  0x16   :  { %614 = shalt.err (!%p611_p9)
}
  0x17   :  { %35 = dma.hbm_to_vmem [thread:$0]  %s675_s2, 1664, %s30_s20, [#allocation5], %s620_s15, %s620_s15, %s621_s16  }
  0x18   :  { %615 = dma.done.wait [#allocation3], 1664  }
  0x19   :  { %616 = vsyncadd [#allocation3], 4294965632 }
  0x1a   :  { %617 = dma.done.wait [#allocation5], 1664  }
  0x1b   :  { %618 = vsyncadd [#allocation5], 4294965632  ;;  %v623_v0 = vmov 0   ;;  %vm100_vm0 = vcmask 130048   ;;  %v43_v1 = vld [vmem:[%s673_s0 + $0x8] sm:$0xff]  ;;  %v42_v2 = vld [vmem:[%s673_s0] sm:$0xff] }
  0x1c   :  { %569 = vset.pattern.permute.xlu0 %v623_v0  ;;  %570 = vset.pattern.permute.xlu1 %v623_v0  ;;  %v44_v3 = vld [vmem:[#allocation2] sm:$0xff]  ;;  %v45_v4 = vld [vmem:[#allocation2 + $0x8] sm:$0xff]  ;;  %v46_v5 = vld [vmem:[#allocation2 + $0x10] sm:$0xff]  ;;  %vm266_vm1 = vcmask 523264   ;;  %v624_v60 = vmov 0.0   ;;  %vm625_vm2 = vmmov 0  }
  0x1d   :  { %513 = vmatprep.subr.mxu0 %v43_v1  ;;  %517 = vmatprep.mubr.msk.f32.mxu0 %vm100_vm0, %v44_v3  ;;  %v59_v6 = vld [vmem:[#allocation4 + $0x38] sm:$0xff]  ;;  %v57_v7 = vld [vmem:[#allocation4 + $0x28] sm:$0xff]  ;;  %v58_v8 = vld [vmem:[#allocation4 + $0x30] sm:$0xff]  ;;  %vm375_vm3 = vcmask 261120  }
  0x1e   :  { %514 = vmatpush3.msra.mxu0 %v43_v1  ;;  %97 = vperm.xlu0 %569, %v59_v6   ;;  %v47_v9 = vld [vmem:[#allocation2 + $0x18] sm:$0xff]  ;;  %v56_v10 = vld [vmem:[#allocation4 + $0x20] sm:$0xff]  ;;  %v48_v11 = vld [vmem:[#allocation2 + $0x20] sm:$0xff] }
  0x1f   :  { %515 = vmatprep.subr.mxu0 %v42_v2  ;;  %87 = vperm.xlu1 %570, %v57_v7   ;;  %v55_v12 = vld [vmem:[#allocation4 + $0x18] sm:$0xff]  ;;  %v49_v13 = vld [vmem:[#allocation2 + $0x28] sm:$0xff]  ;;  %v54_v14 = vld [vmem:[#allocation4 + $0x10] sm:$0xff] }
  0x20   :  { %516 = vmatpush3.msra.mxu0 %v42_v2  ;;  %v50_v15 = vld [vmem:[#allocation2 + $0x30] sm:$0xff]  ;;  %v51_v17 = vld [vmem:[#allocation2 + $0x38] sm:$0xff]  ;;  %v52_v18 = vld [vmem:[#allocation4] sm:$0xff] }
  0x21   :  { %518 = vmatmul.mubr.msk.f32.vlgmr.msra.gmra.mxu0 %vm100_vm0, %v45_v4  ;;  %v53_v16 = vld [vmem:[#allocation4 + $0x8] sm:$0xff]  ;;  %v245_v19 = vld [vmem:[#allocation4 + $0x58] sm:$0xff]  ;;  %v244_v20 = vld [vmem:[#allocation4 + $0x50] sm:$0xff]  ;;  %551 = vmatprep.subr.mxu0 %v624_v60 }
  0x22   :  { %520 = vmatprep.mubr.msk.f32.mxu0 %vm100_vm0, %v46_v5  ;;  %92 = vperm.xlu0 %569, %v58_v8   ;;  %v243_v21 = vld [vmem:[#allocation4 + $0x48] sm:$0xff]  ;;  %v242_v22 = vld [vmem:[#allocation4 + $0x40] sm:$0xff]  ;;  %v238_v24 = vld [vmem:[#allocation2 + $0x40] sm:$0xff] }
  0x23   :  { %82 = vperm.xlu1 %570, %v56_v10   ;;  %v369_v23 = vld [vmem:[#allocation4 + $0x60] sm:$0xff]  ;;  %545 = vmatprep.mubr.msk.f32.mxu1 %vm266_vm1, %v238_v24  ;;  %v240_v58 = vld [vmem:[#allocation2 + $0x50] sm:$0xff]  ;;  %v241_v59 = vld [vmem:[#allocation2 + $0x58] sm:$0xff] }
  0x24   :  { %v239_v57 = vld [vmem:[#allocation2 + $0x48] sm:$0xff] }
  0x25   :  { %521 = vmatmul.mubr.msk.f32.gmra.mxu0 %vm100_vm0, %v47_v9 }
  0x26   :  { %523 = vmatprep.mubr.msk.f32.mxu0 %vm100_vm0, %v48_v11  ;;  %77 = vperm.xlu0 %569, %v55_v12  }
  0x27   :  { %72 = vperm.xlu1 %570, %v54_v14  }
  0x29   :  { %524 = vmatmul.mubr.msk.f32.gmra.mxu0 %vm100_vm0, %v49_v13  ;;  %v368_v13 = vld [vmem:[#allocation2 + $0x60] sm:$0xff] }
  0x2a   :  { %526 = vmatprep.mubr.msk.f32.mxu0 %vm100_vm0, %v50_v15  ;;  %67 = vperm.xlu0 %569, %v53_v16  }
  0x2b   :  { %62 = vperm.xlu1 %570, %v52_v18  }
  0x2d   :  { %527 = vmatmul.mubr.msk.f32.gmra.mxu0 %vm100_vm0, %v51_v17 }
  0x2e   :  { %263 = vperm.xlu0 %569, %v245_v19   ;;  %559 = vmatprep.mubr.msk.f32.mxu0 %vm625_vm2, %v624_v60 }
  0x2f   :  { %258 = vperm.xlu1 %570, %v244_v20  }
  0x32   :  { %253 = vperm.xlu0 %569, %v243_v21  }
  0x33   :  { %248 = vperm.xlu1 %570, %v242_v22  }
  0x36   :  { %372 = vperm.xlu0 %569, %v369_v23  }
  0x99   :  { %v98_v27 = vpop.permute.xlu0 %97 }
  0x9a   :  { %v88_v28 = vpop.permute.xlu1 %87 }
  0x9d   :  { %v93_v32 = vpop.permute.xlu0 %92 }
  0x9e   :  { %v83_v33 = vpop.permute.xlu1 %82 }
  0xa1   :  { %v78_v41 = vpop.permute.xlu0 %77 }
  0xa2   :  { %v73_v42 = vpop.permute.xlu1 %72 }
  0xa5   :  { %v68_v49 = vpop.permute.xlu0 %67 }
  0xa6   :  { %v63_v50 = vpop.permute.xlu1 %62 }
  0xa9   :  { %v264_v61 = vpop.permute.xlu0 %263 }
  0xaa   :  { %v259_v63 = vpop.permute.xlu1 %258 }
  0xad   :  { %v254_v3 = vpop.permute.xlu0 %253 }
  0xae   :  { %v249_v8 = vpop.permute.xlu1 %248 }
  0xb1   :  { %v373_v14 = vpop.permute.xlu0 %372 }
  0xe1   :  { %v519_v25 = vpop.f32.mrf.mxu0 }
  0xe2   :  { %v197_v51 = vadd.f32 %v519_v25, %v68_v49 }
  0xe3   :  { %v191_v26 = vpop.f32.mrf.mxu0 }
  0xe4   :  { %v192_v53 = vadd.f32 %v191_v26, %v63_v50  ;;  %v231_v55 = vmax.f32 %v197_v51, 0.0 }
  0xe5   :  { %v522_v29 = vpop.f32.mrf.mxu0 }
  0xe6   :  { %v207_v45 = vadd.f32 %v522_v29, %v78_v41  ;;  %v230_v56 = vmax.f32 %v192_v53, 0.0 }
  0xe7   :  { %v201_v30 = vpop.f32.mrf.mxu0 }
  0xe8   :  { %v202_v47 = vadd.f32 %v201_v30, %v73_v42  ;;  %v233_v52 = vmax.f32 %v207_v45, 0.0 }
  0xe9   :  { %v525_v31 = vpop.f32.mrf.mxu0 }
  0xea   :  { %v217_v38 = vadd.f32 %v525_v31, %v88_v28  ;;  %v232_v54 = vmax.f32 %v202_v47, 0.0 }
  0xeb   :  { %v211_v34 = vpop.f32.mrf.mxu0 }
  0xec   :  { %v212_v43 = vadd.f32 %v211_v34, %v83_v33  ;;  %v235_v46 = vmax.f32 %v217_v38, 0.0 }
  0xed   :  { %v528_v35 = vpop.f32.mrf.mxu0 }
  0xee   :  { %v227_v36 = vadd.f32 %v528_v35, %v98_v27  ;;  %v234_v48 = vmax.f32 %v212_v43, 0.0 }
  0xef   :  { %v221_v37 = vpop.f32.mrf.mxu0 }
  0xf0   :  { %v237_v39 = vmax.f32 %v227_v36, 0.0  ;;  %v222_v40 = vadd.f32 %v221_v37, %v93_v32 }
  0xf2   :  { %v236_v44 = vmax.f32 %v222_v40, 0.0  ;;  %529 = vmatprep.subr.mxu1 %v237_v39 }
  0xf3   :  { %530 = vmatpush3.msra.mxu1 %v237_v39 }
  0xf4   :  { %531 = vmatprep.subr.mxu1 %v236_v44 }
  0xf5   :  { %532 = vmatpush3.msra.mxu1 %v236_v44 }
  0xf6   :  { %533 = vmatprep.subr.mxu1 %v235_v46 }
  0xf7   :  { %534 = vmatpush3.msra.mxu1 %v235_v46 }
  0xf8   :  { %535 = vmatprep.subr.mxu1 %v234_v48 }
  0xf9   :  { %536 = vmatpush3.msra.mxu1 %v234_v48 }
  0xfa   :  { %537 = vmatprep.subr.mxu1 %v233_v52 }
  0xfb   :  { %538 = vmatpush3.msra.mxu1 %v233_v52 }
  0xfc   :  { %539 = vmatprep.subr.mxu1 %v232_v54 }
  0xfd   :  { %540 = vmatpush3.msra.mxu1 %v232_v54 }
  0xfe   :  { %541 = vmatprep.subr.mxu1 %v231_v55 }
  0xff   :  { %542 = vmatpush3.msra.mxu1 %v231_v55 }
 0x100   :  { %543 = vmatprep.subr.mxu1 %v230_v56 }
 0x101   :  { %544 = vmatpush3.msra.mxu1 %v230_v56 }
 0x102   :  { %546 = vmatmul.mubr.msk.f32.vlgmr.msra.gmra.mxu1 %vm266_vm1, %v239_v57 }
 0x103   :  { %548 = vmatprep.mubr.msk.f32.mxu1 %vm266_vm1, %v240_v58 }
 0x106   :  { %549 = vmatmul.mubr.msk.f32.gmra.mxu1 %vm266_vm1, %v241_v59 }
 0x1c2   :  { %v547_v62 = vpop.f32.mrf.mxu1 }
 0x1c3   :  { %v351_v5 = vadd.f32 %v547_v62, %v254_v3 }
 0x1c4   :  { %v345_v0 = vpop.f32.mrf.mxu1 }
 0x1c5   :  { %v346_v9 = vadd.f32 %v345_v0, %v249_v8  ;;  %v365_v11 = vmax.f32 %v351_v5, 0.0 }
 0x1c6   :  { %v550_v1 = vpop.f32.mrf.mxu1 }
 0x1c7   :  { %v361_v2 = vadd.f32 %v550_v1, %v264_v61  ;;  %v364_v12 = vmax.f32 %v346_v9, 0.0 }
 0x1c8   :  { %v355_v4 = vpop.f32.mrf.mxu1 }
 0x1c9   :  { %v367_v6 = vmax.f32 %v361_v2, 0.0  ;;  %v356_v7 = vadd.f32 %v355_v4, %v259_v63 }
 0x1cb   :  { %v366_v10 = vmax.f32 %v356_v7, 0.0  ;;  %552 = vmatpush3.msra.mxu0 %v367_v6 }
 0x1cc   :  { %553 = vmatprep.subr.mxu0 %v624_v60 }
 0x1cd   :  { %554 = vmatpush3.msra.mxu0 %v366_v10 }
 0x1ce   :  { %555 = vmatprep.subr.mxu0 %v624_v60 }
 0x1cf   :  { %556 = vmatpush3.msra.mxu0 %v365_v11 }
 0x1d0   :  { %557 = vmatprep.subr.mxu0 %v624_v60 }
 0x1d1   :  { %558 = vmatpush3.msra.mxu0 %v364_v12 }
 0x1d2   :  { %560 = vmatmul.mubr.msk.f32.vlgmr.msra.gmra.mxu0 %vm375_vm3, %v368_v13 }
 0x292   :  { %v445_v15 = vpop.f32.mrf.mxu0 }
 0x293   :  { %v446_v16 = vadd.f32 %v445_v15, %v373_v14 }
 0x294   :  { %v561_v17 = vpop.f32.mrf.mxu0 }
 0x295   :  { %v449_v18 = vrot.slane %v446_v16, 4 }
 0x297   :  { %v450_v19 = vmax.f32 %v446_v16, %v449_v18 }
 0x299   :  { %v451_v20 = vrot.slane %v450_v19, 2 }
 0x29b   :  { %v452_v21 = vmax.f32 %v450_v19, %v451_v20 }
 0x29d   :  { %v453_v22 = vrot.slane %v452_v21, 1 }
 0x29f   :  { %v454_v23 = vmax.f32 %v452_v21, %v453_v22 }
 0x2a1   :  { %v455_v24 = vsub.f32 %v446_v16, %v454_v23 }
 0x2a3   :  { %v456_v25 = vmul.f32 1.442695, %v455_v24 }
 0x2a5   :  { %571 = vpow2.f32 %v456_v25 }
 0x2b2   :  { %v572_v26 = vpop.eup %571 }
 0x2b3   :  { %v458_v27 = vrot.slane %v572_v26, 4 }
 0x2b5   :  { %v459_v28 = vadd.f32 %v572_v26, %v458_v27 }
 0x2b7   :  { %v460_v29 = vrot.slane %v459_v28, 2 }
 0x2b9   :  { %v461_v30 = vadd.f32 %v460_v29, %v459_v28 }
 0x2bb   :  { %v462_v31 = vrot.slane %v461_v30, 1 }
 0x2bd   :  { %v463_v32 = vadd.f32 %v462_v31, %v461_v30 }
 0x2bf   :  { %573 = vrcp.f32 %v463_v32 }
 0x2cc   :  { %v574_v33 = vpop.eup %573 }
 0x2cd   :  { %v465_v34 = vmul.f32 %v574_v33, %v572_v26 }
 0x2cf   :  { %466 = vst [vmem:[%s676_s3] sm:$0xff] %v465_v34 }
 0x2d0   :  { %471 = vsyncpa [#allocation3], 1 }
 0x2d1   :  { %472 = vsyncpa [#allocation5], 1 }

</bundles_post_ra>
